<compile_context>
chip_gen: v6e
topology: v6e:2x2x1
jax: 0.10.0
libtpu: 0.0.40
codegen_flags: <defaults>
</compile_context>

<pallas_src>
import functools

import jax
import jax.numpy as jnp
from jax.experimental import pallas as pl
from jax.experimental.pallas import tpu as pltpu


def _focal_kernel(pred_ref, tgt_ref, sum_ref, cnt_ref, *,
                  n_classes, alpha, gamma, ignore_id):
    # Per-(batch, chunk) accumulators live in the resident output blocks;
    # zero them on the first step of the reduction (pixel-tile) axis.
    @pl.when(pl.program_id(2) == 0)
    def _():
        sum_ref[...] = jnp.zeros_like(sum_ref)
        cnt_ref[...] = jnp.zeros_like(cnt_ref)

    tgt = tgt_ref[0, 0].astype(jnp.int32)                 # (S, 128)

    # Class max via unrolled elementwise maxes (VPU only, no XLU sublane reduce).
    m = pred_ref[0, 0].astype(jnp.float32)                # (S, 128)
    for k in range(1, n_classes):
        m = jnp.maximum(m, pred_ref[0, k].astype(jnp.float32))

    # exp / softmax denominator / target-class numerator, one dense slab per class.
    denom = jnp.zeros_like(m)
    e_t = jnp.zeros_like(m)
    for k in range(n_classes):
        e_k = jnp.exp(pred_ref[0, k].astype(jnp.float32) - m)
        denom = denom + e_k
        e_t = jnp.where(tgt == k, e_k, e_t)

    # p_t = e_t / denom via EUP approx reciprocal + one Newton step
    # (denom in [1, C], rel error ~1e-8 -> well within 1e-5 tolerance).
    inv = pl.reciprocal(denom, approx=True)
    inv = inv * (2.0 - denom * inv)
    p_t = e_t * inv                                       # (S, 128)

    one_minus = 1.0 - p_t
    if isinstance(gamma, int) and 0 <= gamma <= 4:
        mod = jnp.ones_like(p_t) if gamma == 0 else one_minus
        for _ in range(max(gamma - 1, 0)):
            mod = mod * one_minus
    else:
        mod = one_minus ** float(gamma)

    per_pixel = (-alpha) * mod * jnp.log(p_t + 1e-8)      # (S, 128)

    # Only mask needed: ignore_id pixels (padding was filled with ignore_id).
    valid = tgt != ignore_id
    sum_ref[0, 0] += jnp.where(valid, per_pixel, 0.0)
    cnt_ref[0, 0] += valid.astype(jnp.float32)


def multi_focal_loss(predict, target, alpha=0.25, gamma=2, ignore_id=-1):
    """predict: (B, C, H, W) float; target: (B, H, W) int.  Returns scalar."""
    B, C, H, W = predict.shape
    hw = H * W

    # ---- VMEM-budget-aware tile sizing (per-generation) --------------------
    try:
        vmem_phys = int(pltpu.get_tpu_info().vmem_capacity_bytes)
    except Exception:
        vmem_phys = 64 << 20                       # v7x-conservative fallback
    budget = min(vmem_phys // 8, 8 << 20)          # working-set target
    vmem_limit = min(vmem_phys // 2, 64 << 20)     # scoped limit w/ headroom

    pred_bytes = jnp.dtype(predict.dtype).itemsize
    tgt_bytes = jnp.dtype(target.dtype).itemsize
    # double-buffered pred + tgt blocks, plus sum/cnt accumulator blocks, per
    # 128-pixel sublane slab.
    per_slab = 2 * 128 * (C * pred_bytes + tgt_bytes) + 2 * 2 * 128 * 4
    s_cap = min(max(budget // per_slab, 8), 512)   # cap at 64K pixels / step
    s_cap = max(8, (s_cap // 8) * 8)

    n_slabs = pl.cdiv(hw, 128)
    total_tiles = max(pl.cdiv(n_slabs, s_cap), 1)
    # Extra parallel "chunk" axis so B == 1 / odd B still spans both v7x cores
    # (no measured effect on single-TC v5e/v6e; wrapper reduce absorbs it).
    if total_tiles >= 2 or (B == 1 and n_slabs >= 16):
        n_chunks = 2
        total_tiles = max(total_tiles, 2)
    else:
        n_chunks = 1
    total_tiles = ((total_tiles + n_chunks - 1) // n_chunks) * n_chunks
    if total_tiles == 1:
        S = n_slabs                                # equals full dim -> legal
    else:
        S = -(-n_slabs // total_tiles)
        S = ((S + 7) // 8) * 8                     # sublane multiple of 8
    tiles_per_chunk = total_tiles // n_chunks
    hw_pad = total_tiles * S * 128

    # ---- free reshapes; pad only when hw is not tile-aligned ---------------
    pred = predict.reshape(B, C, hw)
    tgt = target.reshape(B, 1, hw)                 # native dtype, cast in-kernel
    if hw_pad != hw:
        pad = hw_pad - hw
        pred = jnp.pad(pred, ((0, 0), (0, 0), (0, pad)))
        if not jnp.issubdtype(tgt.dtype, jnp.signedinteger):
            tgt = tgt.astype(jnp.int32)
        tgt = jnp.pad(tgt, ((0, 0), (0, 0), (0, pad)),
                      constant_values=int(ignore_id))
    pred = pred.reshape(B, C, total_tiles * S, 128)
    tgt = tgt.reshape(B, 1, total_tiles * S, 128)

    kernel = functools.partial(
        _focal_kernel, n_classes=C, alpha=float(alpha), gamma=gamma,
        ignore_id=int(ignore_id))

    sum_out, cnt_out = pl.pallas_call(
        kernel,
        out_shape=(jax.ShapeDtypeStruct((B, n_chunks, S, 128), jnp.float32),
                   jax.ShapeDtypeStruct((B, n_chunks, S, 128), jnp.float32)),
        grid_spec=pltpu.PrefetchScalarGridSpec(
            num_scalar_prefetch=0,
            grid=(B, n_chunks, tiles_per_chunk),
            in_specs=[
                pl.BlockSpec((1, C, S, 128),
                             lambda b, c, j: (b, 0, c * tiles_per_chunk + j, 0)),
                pl.BlockSpec((1, 1, S, 128),
                             lambda b, c, j: (b, 0, c * tiles_per_chunk + j, 0)),
            ],
            out_specs=[
                pl.BlockSpec((1, 1, S, 128), lambda b, c, j: (b, c, 0, 0)),
                pl.BlockSpec((1, 1, S, 128), lambda b, c, j: (b, c, 0, 0)),
            ],
        ),
        compiler_params=pltpu.CompilerParams(
            dimension_semantics=("parallel", "parallel", "arbitrary"),
            vmem_limit_bytes=int(vmem_limit)),
    )(pred, tgt)

    # f_loss.mean() where f_loss was already scaled by b  ==  B * sum / count
    total = jnp.sum(sum_out)
    count = jnp.sum(cnt_out)
    return (float(B) * total / count).astype(jnp.float32)


def _reference(predict, target, alpha=0.25, gamma=2, ignore_id=-1):
    B, C, H, W = predict.shape
    p = jax.nn.softmax(jnp.transpose(predict, (0, 2, 3, 1)), axis=-1).reshape(-1, C)
    t = target.reshape(-1)
    mask = t != ignore_id
    one_hot = jax.nn.one_hot(jnp.where(mask, t, 0), C, dtype=jnp.float32)
    f = jnp.sum(-alpha * (1.0 - p) ** gamma * one_hot * jnp.log(p + 1e-8), axis=-1) * B
    return jnp.sum(jnp.where(mask, f, 0.0)) / jnp.sum(mask)


if __name__ == "__main__":
    key = jax.random.PRNGKey(0)
    k1, k2 = jax.random.split(key)

    B, C, H, W = 2, 4, 16, 16
    predict = jax.random.normal(k1, (B, C, H, W), dtype=jnp.float32)
    # targets in [-1, C): -1 == ignore_id exercises the mask path
    target = jax.random.randint(k2, (B, H, W), -1, C, dtype=jnp.int32)

    loss = multi_focal_loss(predict, target)
    loss = jax.block_until_ready(loss)

    ref = jax.block_until_ready(_reference(predict, target))
    assert jnp.allclose(loss, ref, rtol=1e-5, atol=1e-5), (loss, ref)

    print("KERNEL_OK")
</pallas_src>

<mosaic_0001>
module attributes {stable_mosaic.version = 11 : i64} {
  func.func @_focal_kernel(%arg0: i32, %arg1: i32, %arg2: i32, %arg3: memref<1x4x2x128xf32, #tpu.memory_space<vmem>>, %arg4: memref<1x1x2x128xi32, #tpu.memory_space<vmem>>, %arg5: memref<1x1x2x128xf32, #tpu.memory_space<vmem>>, %arg6: memref<1x1x2x128xf32, #tpu.memory_space<vmem>>) attributes {dimension_semantics = [#tpu.dimension_semantics<parallel>, #tpu.dimension_semantics<parallel>, #tpu.dimension_semantics<arbitrary>], iteration_bounds = array<i64: 2, 1, 1>, scalar_prefetch = 0 : i64, scratch_operands = 0 : i64, tpu.core_type = #tpu.core_type<tc>, window_params = [{transform_indices = @transform_0, window_bounds = array<i64: 1, 4, 2, 128>}, {transform_indices = @transform_1, window_bounds = array<i64: 1, 1, 2, 128>}, {transform_indices = @transform_2, window_bounds = array<i64: 1, 1, 2, 128>}, {transform_indices = @transform_3, window_bounds = array<i64: 1, 1, 2, 128>}]} {
    %c0_i32 = arith.constant 0 : i32
    %0 = arith.cmpi eq, %arg2, %c0_i32 : i32
    %1 = arith.extui %0 : i1 to i32
    %c0_i32_0 = arith.constant 0 : i32
    %2 = arith.cmpi ne, %1, %c0_i32_0 : i32
    scf.if %2 {
      %cst_56 = arith.constant 0.000000e+00 : f32
      %83 = vector.broadcast %cst_56 : f32 to vector<1x1x2x128xf32>
      %c0_57 = arith.constant 0 : index
      %c0_58 = arith.constant 0 : index
      %c0_59 = arith.constant 0 : index
      %c0_60 = arith.constant 0 : index
      %84 = vector.load %arg5[%c0_57, %c0_58, %c0_59, %c0_60] : memref<1x1x2x128xf32, #tpu.memory_space<vmem>>, vector<1x1x2x128xf32>
      tpu.vector_store %arg5[%c0_57, %c0_58, %c0_59, %c0_60], %83 {strides = array<i32>} : memref<1x1x2x128xf32, #tpu.memory_space<vmem>>, vector<1x1x2x128xf32>,
      %cst_61 = arith.constant 0.000000e+00 : f32
      %85 = vector.broadcast %cst_61 : f32 to vector<1x1x2x128xf32>
      %c0_62 = arith.constant 0 : index
      %c0_63 = arith.constant 0 : index
      %c0_64 = arith.constant 0 : index
      %c0_65 = arith.constant 0 : index
      %86 = vector.load %arg6[%c0_62, %c0_63, %c0_64, %c0_65] : memref<1x1x2x128xf32, #tpu.memory_space<vmem>>, vector<1x1x2x128xf32>
      tpu.vector_store %arg6[%c0_62, %c0_63, %c0_64, %c0_65], %85 {strides = array<i32>} : memref<1x1x2x128xf32, #tpu.memory_space<vmem>>, vector<1x1x2x128xf32>,
    } else {
    }
    %c0 = arith.constant 0 : index
    %c0_1 = arith.constant 0 : index
    %c0_2 = arith.constant 0 : index
    %c0_3 = arith.constant 0 : index
    %3 = vector.load %arg4[%c0, %c0_1, %c0_2, %c0_3] : memref<1x1x2x128xi32, #tpu.memory_space<vmem>>, vector<1x1x2x128xi32>
    %4 = vector.shape_cast %3 : vector<1x1x2x128xi32> to vector<2x128xi32>
    %c0_4 = arith.constant 0 : index
    %c0_5 = arith.constant 0 : index
    %c0_6 = arith.constant 0 : index
    %c0_7 = arith.constant 0 : index
    %5 = vector.load %arg3[%c0_4, %c0_5, %c0_6, %c0_7] : memref<1x4x2x128xf32, #tpu.memory_space<vmem>>, vector<1x1x2x128xf32>
    %6 = vector.shape_cast %5 : vector<1x1x2x128xf32> to vector<2x128xf32>
    %c0_8 = arith.constant 0 : index
    %c1 = arith.constant 1 : index
    %c0_9 = arith.constant 0 : index
    %c0_10 = arith.constant 0 : index
    %7 = vector.load %arg3[%c0_8, %c1, %c0_9, %c0_10] : memref<1x4x2x128xf32, #tpu.memory_space<vmem>>, vector<1x1x2x128xf32>
    %8 = vector.shape_cast %7 : vector<1x1x2x128xf32> to vector<2x128xf32>
    %9 = arith.maximumf %6, %8 : vector<2x128xf32>
    %c0_11 = arith.constant 0 : index
    %c2 = arith.constant 2 : index
    %c0_12 = arith.constant 0 : index
    %c0_13 = arith.constant 0 : index
    %10 = vector.load %arg3[%c0_11, %c2, %c0_12, %c0_13] : memref<1x4x2x128xf32, #tpu.memory_space<vmem>>, vector<1x1x2x128xf32>
    %11 = vector.shape_cast %10 : vector<1x1x2x128xf32> to vector<2x128xf32>
    %12 = arith.maximumf %9, %11 : vector<2x128xf32>
    %c0_14 = arith.constant 0 : index
    %c3 = arith.constant 3 : index
    %c0_15 = arith.constant 0 : index
    %c0_16 = arith.constant 0 : index
    %13 = vector.load %arg3[%c0_14, %c3, %c0_15, %c0_16] : memref<1x4x2x128xf32, #tpu.memory_space<vmem>>, vector<1x1x2x128xf32>
    %14 = vector.shape_cast %13 : vector<1x1x2x128xf32> to vector<2x128xf32>
    %15 = arith.maximumf %12, %14 : vector<2x128xf32>
    %cst = arith.constant 0.000000e+00 : f32
    %16 = vector.broadcast %cst : f32 to vector<2x128xf32>
    %cst_17 = arith.constant 0.000000e+00 : f32
    %17 = vector.broadcast %cst_17 : f32 to vector<2x128xf32>
    %c0_18 = arith.constant 0 : index
    %c0_19 = arith.constant 0 : index
    %c0_20 = arith.constant 0 : index
    %c0_21 = arith.constant 0 : index
    %18 = vector.load %arg3[%c0_18, %c0_19, %c0_20, %c0_21] : memref<1x4x2x128xf32, #tpu.memory_space<vmem>>, vector<1x1x2x128xf32>
    %19 = vector.shape_cast %18 : vector<1x1x2x128xf32> to vector<2x128xf32>
    %20 = arith.subf %19, %15 : vector<2x128xf32>
    %21 = math.exp %20 : vector<2x128xf32>
    %22 = arith.addf %16, %21 : vector<2x128xf32>
    %c0_i32_22 = arith.constant 0 : i32
    %23 = vector.broadcast %c0_i32_22 : i32 to vector<2x128xi32>
    %24 = arith.cmpi eq, %4, %23 : vector<2x128xi32>
    %25 = arith.select %24, %21, %17 : vector<2x128xi1>, vector<2x128xf32>
    %c0_23 = arith.constant 0 : index
    %c1_24 = arith.constant 1 : index
    %c0_25 = arith.constant 0 : index
    %c0_26 = arith.constant 0 : index
    %26 = vector.load %arg3[%c0_23, %c1_24, %c0_25, %c0_26] : memref<1x4x2x128xf32, #tpu.memory_space<vmem>>, vector<1x1x2x128xf32>
    %27 = vector.shape_cast %26 : vector<1x1x2x128xf32> to vector<2x128xf32>
    %28 = arith.subf %27, %15 : vector<2x128xf32>
    %29 = math.exp %28 : vector<2x128xf32>
    %30 = arith.addf %22, %29 : vector<2x128xf32>
    %c1_i32 = arith.constant 1 : i32
    %31 = vector.broadcast %c1_i32 : i32 to vector<2x128xi32>
    %32 = arith.cmpi eq, %4, %31 : vector<2x128xi32>
    %33 = arith.select %32, %29, %25 : vector<2x128xi1>, vector<2x128xf32>
    %c0_27 = arith.constant 0 : index
    %c2_28 = arith.constant 2 : index
    %c0_29 = arith.constant 0 : index
    %c0_30 = arith.constant 0 : index
    %34 = vector.load %arg3[%c0_27, %c2_28, %c0_29, %c0_30] : memref<1x4x2x128xf32, #tpu.memory_space<vmem>>, vector<1x1x2x128xf32>
    %35 = vector.shape_cast %34 : vector<1x1x2x128xf32> to vector<2x128xf32>
    %36 = arith.subf %35, %15 : vector<2x128xf32>
    %37 = math.exp %36 : vector<2x128xf32>
    %38 = arith.addf %30, %37 : vector<2x128xf32>
    %c2_i32 = arith.constant 2 : i32
    %39 = vector.broadcast %c2_i32 : i32 to vector<2x128xi32>
    %40 = arith.cmpi eq, %4, %39 : vector<2x128xi32>
    %41 = arith.select %40, %37, %33 : vector<2x128xi1>, vector<2x128xf32>
    %c0_31 = arith.constant 0 : index
    %c3_32 = arith.constant 3 : index
    %c0_33 = arith.constant 0 : index
    %c0_34 = arith.constant 0 : index
    %42 = vector.load %arg3[%c0_31, %c3_32, %c0_33, %c0_34] : memref<1x4x2x128xf32, #tpu.memory_space<vmem>>, vector<1x1x2x128xf32>
    %43 = vector.shape_cast %42 : vector<1x1x2x128xf32> to vector<2x128xf32>
    %44 = arith.subf %43, %15 : vector<2x128xf32>
    %45 = math.exp %44 : vector<2x128xf32>
    %46 = arith.addf %38, %45 : vector<2x128xf32>
    %c3_i32 = arith.constant 3 : i32
    %47 = vector.broadcast %c3_i32 : i32 to vector<2x128xi32>
    %48 = arith.cmpi eq, %4, %47 : vector<2x128xi32>
    %49 = arith.select %48, %45, %41 : vector<2x128xi1>, vector<2x128xf32>
    %50 = tpu.reciprocal %46 {approx = true} : vector<2x128xf32> -> vector<2x128xf32>
    %51 = arith.mulf %46, %50 : vector<2x128xf32>
    %cst_35 = arith.constant 2.000000e+00 : f32
    %52 = vector.broadcast %cst_35 : f32 to vector<2x128xf32>
    %53 = arith.subf %52, %51 : vector<2x128xf32>
    %54 = arith.mulf %50, %53 : vector<2x128xf32>
    %55 = arith.mulf %49, %54 : vector<2x128xf32>
    %cst_36 = arith.constant 1.000000e+00 : f32
    %56 = vector.broadcast %cst_36 : f32 to vector<2x128xf32>
    %57 = arith.subf %56, %55 : vector<2x128xf32>
    %58 = arith.mulf %57, %57 : vector<2x128xf32>
    %cst_37 = arith.constant -2.500000e-01 : f32
    %59 = vector.broadcast %cst_37 : f32 to vector<2x128xf32>
    %60 = arith.mulf %59, %58 : vector<2x128xf32>
    %cst_38 = arith.constant 9.99999993E-9 : f32
    %61 = vector.broadcast %cst_38 : f32 to vector<2x128xf32>
    %62 = arith.addf %55, %61 : vector<2x128xf32>
    %63 = math.log %62 : vector<2x128xf32>
    %64 = arith.mulf %60, %63 : vector<2x128xf32>
    %c-1_i32 = arith.constant -1 : i32
    %65 = vector.broadcast %c-1_i32 : i32 to vector<2x128xi32>
    %66 = arith.cmpi ne, %4, %65 : vector<2x128xi32>
    %c0_39 = arith.constant 0 : index
    %c0_40 = arith.constant 0 : index
    %c0_41 = arith.constant 0 : index
    %c0_42 = arith.constant 0 : index
    %67 = vector.load %arg5[%c0_39, %c0_40, %c0_41, %c0_42] : memref<1x1x2x128xf32, #tpu.memory_space<vmem>>, vector<1x1x2x128xf32>
    %68 = vector.shape_cast %67 : vector<1x1x2x128xf32> to vector<2x128xf32>
    %cst_43 = arith.constant 0.000000e+00 : f32
    %69 = vector.broadcast %cst_43 : f32 to vector<2x128xf32>
    %70 = arith.select %66, %64, %69 : vector<2x128xi1>, vector<2x128xf32>
    %71 = arith.addf %68, %70 : vector<2x128xf32>
    %c0_44 = arith.constant 0 : index
    %c0_45 = arith.constant 0 : index
    %c0_46 = arith.constant 0 : index
    %c0_47 = arith.constant 0 : index
    %72 = vector.load %arg5[%c0_44, %c0_45, %c0_46, %c0_47] : memref<1x1x2x128xf32, #tpu.memory_space<vmem>>, vector<1x1x2x128xf32>
    %73 = vector.shape_cast %72 : vector<1x1x2x128xf32> to vector<2x128xf32>
    %74 = vector.shape_cast %71 : vector<2x128xf32> to vector<1x1x2x128xf32>
    tpu.vector_store %arg5[%c0_44, %c0_45, %c0_46, %c0_47], %74 {strides = array<i32>} : memref<1x1x2x128xf32, #tpu.memory_space<vmem>>, vector<1x1x2x128xf32>,
    %c0_48 = arith.constant 0 : index
    %c0_49 = arith.constant 0 : index
    %c0_50 = arith.constant 0 : index
    %c0_51 = arith.constant 0 : index
    %75 = vector.load %arg6[%c0_48, %c0_49, %c0_50, %c0_51] : memref<1x1x2x128xf32, #tpu.memory_space<vmem>>, vector<1x1x2x128xf32>
    %76 = vector.shape_cast %75 : vector<1x1x2x128xf32> to vector<2x128xf32>
    %77 = arith.extui %66 : vector<2x128xi1> to vector<2x128xi32>
    %78 = arith.sitofp %77 : vector<2x128xi32> to vector<2x128xf32>
    %79 = arith.addf %76, %78 : vector<2x128xf32>
    %c0_52 = arith.constant 0 : index
    %c0_53 = arith.constant 0 : index
    %c0_54 = arith.constant 0 : index
    %c0_55 = arith.constant 0 : index
    %80 = vector.load %arg6[%c0_52, %c0_53, %c0_54, %c0_55] : memref<1x1x2x128xf32, #tpu.memory_space<vmem>>, vector<1x1x2x128xf32>
    %81 = vector.shape_cast %80 : vector<1x1x2x128xf32> to vector<2x128xf32>
    %82 = vector.shape_cast %79 : vector<2x128xf32> to vector<1x1x2x128xf32>
    tpu.vector_store %arg6[%c0_52, %c0_53, %c0_54, %c0_55], %82 {strides = array<i32>} : memref<1x1x2x128xf32, #tpu.memory_space<vmem>>, vector<1x1x2x128xf32>,
    return
  }
  func.func @transform_0(%arg0: i32, %arg1: i32, %arg2: i32) -> (i32, i32, i32, i32) {
    %c1_i32 = arith.constant 1 : i32
    %0 = arith.muli %arg1, %c1_i32 : i32
    %1 = arith.addi %0, %arg2 : i32
    %c0_i32 = arith.constant 0 : i32
    %c0_i32_0 = arith.constant 0 : i32
    %c0_i32_1 = arith.constant 0 : i32
    return %arg0, %c0_i32, %1, %c0_i32_0 : i32, i32, i32, i32
  }
  func.func @transform_1(%arg0: i32, %arg1: i32, %arg2: i32) -> (i32, i32, i32, i32) {
    %c1_i32 = arith.constant 1 : i32
    %0 = arith.muli %arg1, %c1_i32 : i32
    %1 = arith.addi %0, %arg2 : i32
    %c0_i32 = arith.constant 0 : i32
    %c0_i32_0 = arith.constant 0 : i32
    %c0_i32_1 = arith.constant 0 : i32
    return %arg0, %c0_i32, %1, %c0_i32_0 : i32, i32, i32, i32
  }
  func.func @transform_2(%arg0: i32, %arg1: i32, %arg2: i32) -> (i32, i32, i32, i32) {
    %c0_i32 = arith.constant 0 : i32
    %c0_i32_0 = arith.constant 0 : i32
    %c0_i32_1 = arith.constant 0 : i32
    return %arg0, %arg1, %c0_i32, %c0_i32_0 : i32, i32, i32, i32
  }
  func.func @transform_3(%arg0: i32, %arg1: i32, %arg2: i32) -> (i32, i32, i32, i32) {
    %c0_i32 = arith.constant 0 : i32
    %c0_i32_0 = arith.constant 0 : i32
    %c0_i32_1 = arith.constant 0 : i32
    return %arg0, %arg1, %c0_i32, %c0_i32_0 : i32, i32, i32, i32
  }
}

</mosaic_0001>

<bundles_post_ra>
// kernel: tpu_custom_call.1
= control target key start
LH: loop header
LB: loop body
LE: loop exit
PB: predicated region body
PF: predicated region fallthrough
CT: control target
= control target key end

     0   :  { %s1036_s0 = inlined_call_operand.hbm [shape: f32[2,4,2,128], index: 0, kind: input, shape index: {}]   ;;  %s1037_s1 = inlined_call_operand.hbm [shape: s32[2,1,2,128], index: 1, kind: input, shape index: {}]   ;;  %s1038_s2 = inlined_call_operand.hbm [shape: f32[2,1,2,128], index: 2, kind: output, shape index: {0}]   ;;  %s1039_s3 = inlined_call_operand.hbm [shape: f32[2,1,2,128], index: 3, kind: output, shape index: {1}]  }
   0x1   :  { %1040 = sst [smem:[#allocation14_spill]] %s1036_s0 }
   0x2   :  { %9 = vsyncpa [#allocation3], 0 }
   0x3   :  { %11 = vsyncpa [#allocation3 + $0x1], 0 }
   0x4   :  { %12 = vsyncpa [#allocation6], 0 }
   0x5   :  { %14 = vsyncpa [#allocation6 + $0x1], 0 }
   0x6   :  { %15 = vsyncpa [#allocation4], 0 }
   0x7   :  { %17 = vsyncpa [#allocation4 + $0x1], 0 }
   0x8   :  { %18 = vsyncpa [#allocation9], 0 }
   0x9   :  { %20 = vsyncpa [#allocation9 + $0x1], 0  ;;  %s825_s12 = smov 0   ;;  %s827_s13 = smov 0  }
   0xa   :  { %s829_s14 = smov 0   ;;  %s831_s15 = smov 0  }
   0xb   :  { %s833_s16 = smov 0   ;;  %s835_s17 = smov 0  }
   0xc LB: > { %s514_s18 = sadd.s32 4294967295, %s796_s17   ;;  %s515_s19 = sadd.s32 4294967294, %s796_s17   ;;  %s796_s17 = sphi %s835_s17, %s26_s17   ;;  %s792_s16 = sphi %s833_s16, %s1053_s16   ;;  %s788_s15 = sphi %s831_s15, %s1052_s15   ;;  %s784_s14 = sphi %s829_s14, %s1051_s14   ;;  %s780_s13 = sphi %s827_s13, %s1050_s13   ;;  %s776_s12 = sphi %s825_s12, %s1049_s12  }
   0xd   : > { %s45_s20 = sadd.s32 1, %s792_s16  ;;  %s56_s21 = sadd.s32 1, %s784_s14 }
   0xe   : > { %p47_p0 = scmp.ge.s32.totalorder %s45_s20, 2  ;;  %p63_p1 = scmp.ne.s32.totalorder %s784_s14, %s780_s13 }
   0xf   : > { %p64_p2 = scmp.eq.s32.totalorder %s796_s17, 0  ;;  %p69_p3 = scmp.ne.s32.totalorder %s780_s13, %s776_s12 }
  0x10   : > { %s1055_s20 = smov (%p47_p0, %s45_s20), 0  ;;  %p70_p5 = scmp.eq.s32.totalorder %s514_s18, 0 }
  0x11   : > { %p866_p4 = por %p64_p2, %p63_p1  ;;  %s51_s23 = ssub.s32 %s792_s16, %s1055_s20 }
  0x12   : > { %p125_p6 = scmp.eq.s32.totalorder %s514_s18, 1  ;;  %p54_p7 = scmp.eq.s32.totalorder %s51_s23, 0 }
  0x13   : > { %p872_p8 = por %p70_p5, %p69_p3  ;;  %p131_p10 = scmp.eq.s32.totalorder %s515_s19, 1 }
  0x14   : > { %p876_p9 = por %p125_p6, %p63_p1  ;;  %p561_p13 = scmp.lt.s32.totalorder %s796_s17, 2 }
  0x15   : > { %s881_s26 = scalar_select %p54_p7, %s784_s14, %s56_s21  }
  0x16   : > { %p883_p11 = por %p131_p10, %p69_p3  ;;  %s890_s28 = sand.u32 1, %s784_s14  }
  0x17   : > { %s518_s29 = sshll.u32 %s890_s28, 3  ;;  %s538_s30 = sshll.u32 %s792_s16, 7 }
  0x18   : > { %s1045_s0 = sld [smem:[#allocation14_spill]]  ;;  %s183_s7 = scalar_lea.vmem [#allocation2], %s518_s29 }
  0x19   : > { %s192_s8 = sshll.u32 %s183_s7, 4  ;;  %p899_p0 = pnand %p561_p13, %p866_p4  ;;  %s193_s8 = int_to_ptr.vmem [resolvable:$true] %s192_s8 }
  0x1a   : > { %p523_p1 = scmp.ge.s32.totalorder %s796_s17, 1  ;;  %s180_s10 = scalar_lea.sflag [#allocation3], %s890_s28 }
  0x1b   : > { %p628_p2 = pneg %p899_p0  ;;  %s639_s11 = scalar_lea.vmem %s193_s8, 128 }
  0x1c   : > { %p640_p3 = scmp.ne.s32.totalorder %s193_s8, %s639_s11  ;;  %s798_s18 = smov [#allocation2]  }
  0x1d   : > { %s644_s19 = sshll.u32 %s798_s18, 4  ;;  %s645_s19 = int_to_ptr.vmem [resolvable:$false] %s644_s19 }
  0x1e   : > { %s191_s6 = scalar_lea.hbm %s1045_s0, %s538_s30  ;;  %p642_p5 = pnand %p640_p3, %p628_p2 }
  0x1f   : > { %s646_s21 = scalar_lea.vmem %s645_s19, 256  ;;  %p647_p4 = scmp.lt.s32.totalorder %s193_s8, %s645_s19 }
  0x20   : > { %p643_p6 = pneg %p642_p5  ;;  %p648_p7 = scmp.lt.s32.totalorder %s646_s21, %s639_s11 }
  0x22   : > { %p649_p10 = por %p648_p7, %p647_p4 }
  0x24   : > { %p650_p13 = pnand %p649_p10, %p643_p6 }
  0x26   : > { %653 = shalt.err (!%p650_p13)
}
  0x27   : > { %s799_s22 = smov 32   ;;  %s800_s23 = smov 2  }
  0x28   : > { %550 = dma.hbm_to_vmem [thread:$0]  (!%p899_p0), %s191_s6, 128, %s193_s8, %s180_s10, %s799_s22, %s799_s22, %s800_s23  }
  0x29   : > { %p220_p3 = scmp.lt.s32.totalorder %s796_s17, 3  ;;  %s521_s29 = sshll.u32 %s890_s28, 1 }
  0x2a   : > { %s522_s30 = sshll.u32 %s792_s16, 5  ;;  %s206_s18 = scalar_lea.vmem [#allocation5], %s521_s29 }
  0x2b   : > { %p917_p5 = pnand %p523_p1, %p220_p3  ;;  %s213_s11 = scalar_lea.hbm %s1037_s1, %s522_s30 }
  0x2c   : > { %s215_s19 = sshll.u32 %s206_s18, 4  ;;  %s203_s21 = scalar_lea.sflag [#allocation6], %s890_s28  ;;  %s216_s19 = int_to_ptr.vmem [resolvable:$true] %s215_s19 }
  0x2d   : > { %s667_s0 = scalar_lea.vmem %s216_s19, 32  ;;  %s801_s6 = smov [#allocation5]  }
  0x2e   : > { %p668_p6 = scmp.ne.s32.totalorder %s216_s19, %s667_s0  ;;  %s672_s8 = sshll.u32 %s801_s6, 4  ;;  %s673_s8 = int_to_ptr.vmem [resolvable:$false] %s672_s8 }
  0x2f   : > { %s674_s10 = scalar_lea.vmem %s673_s8, 64  ;;  %p675_p1 = scmp.lt.s32.totalorder %s216_s19, %s673_s8 }
  0x30   : > { %p670_p4 = pnand %p668_p6, %p628_p2  ;;  %p676_p10 = scmp.lt.s32.totalorder %s674_s10, %s667_s0 }
  0x32   : > { %p671_p7 = pneg %p670_p4  ;;  %p677_p13 = por %p676_p10, %p675_p1 }
  0x34   : > { %p678_p3 = pnand %p677_p13, %p671_p7 }
  0x36   : > { %681 = shalt.err (!%p678_p3)
}
  0x37   : > { %553 = dma.hbm_to_vmem [thread:$0]  (!%p899_p0), %s213_s11, 32, %s216_s19, %s203_s21  }
  0x38   : > { %224 = sbr.rel (%p917_p5) target bundleno = 170 (0xaa), region = 28  ;;  %s933_s28 = sand.u32 (!%p917_p5), 1, %s780_s13  }
  0x39   : > { %s524_s22 = sshll.u32 (!%p917_p5), %s933_s28, 3  ;;  %s227_s23 = scalar_lea.sflag (!%p917_p5), [#allocation3], %s933_s28 }
  0x3a   : > { %s230_s29 = scalar_lea.vmem (!%p917_p5), [#allocation2], %s524_s22 }
  0x3d   : > { %759 = dma.done.wait (%p872_p8), %s227_s23, 128  }
  0x3e   : > { %761 = vsyncadd (%p872_p8), %s227_s23, 4294967168  ;;  %s525_s0 = sshll.u32 %s933_s28, 1  ;;  %s236_s9 = scalar_lea.sflag [#allocation6], %s933_s28 }
  0x3f   : > { %s239_s30 = scalar_lea.vmem [#allocation5], %s525_s0 }
  0x40   : > { %763 = dma.done.wait (%p872_p8), %s236_s9, 32  }
  0x41   : > { %765 = vsyncadd (%p872_p8), %s236_s9, 4294967264  ;;  %s947_s4 = scalar_lea.vmem [#allocation7], %s525_s0  ;;  %v802_v0 = vmov 0.0   ;;  %s271_s5 = scalar_lea.vmem [#allocation8], %s525_s0  ;;  %v281_v1 = vld [vmem:[%s230_s29] sm:$0x3] }
  0x42   : > { %278 = vst [vmem:[%s947_s4] sm:$0x3] %v802_v0  ;;  %279 = vst [vmem:[%s271_s5] sm:$0x3] %v802_v0  ;;  %v528_v2 = vld [vmem:[%s230_s29 + $0x2] sm:$0x3]  ;;  %v950_v3 = vld [vmem:[%s239_s30] sm:$0x3] }
  0x43   : > { %v284_v4 = vmax.f32 %v281_v1, %v528_v2  ;;  %v529_v5 = vld [vmem:[%s230_s29 + $0x4] sm:$0x3]  ;;  %s534_s7 = sshll.u32 %s788_s15, 5  ;;  %s371_s11 = sshll.u32 %s271_s5, 4  ;;  %v530_v6 = vld [vmem:[%s230_s29 + $0x6] sm:$0x3]  ;;  %s963_s11 = int_to_ptr.vmem [resolvable:$true] %s371_s11 }
  0x44   : > { %vm327_vm0 = vcmp.ne.s32.totalorder %v950_v3, 4294967295  ;;  %s961_s19 = scalar_lea.hbm %s1039_s3, %s534_s7  ;;  %s343_s21 = scalar_lea.sflag [#allocation9], %s933_s28 }
  0x45   : > { %v287_v7 = vmax.f32 %v284_v4, %v529_v5  ;;  %v531_v8 = vsel %vm327_vm0, 1.0, %v802_v0  ;;  %s682_s6 = scalar_lea.vmem %s963_s11, 32  ;;  %s803_s8 = smov [#allocation8]  }
  0x46   : > { %p683_p8 = scmp.ne.s32.totalorder %s963_s11, %s682_s6  ;;  %s686_s10 = sshll.u32 %s803_s8, 4  ;;  %s687_s10 = int_to_ptr.vmem [resolvable:$false] %s686_s10 }
  0x47   : > { %v290_v11 = vmax.f32 %v287_v7, %v530_v6  ;;  %s688_s22 = scalar_lea.vmem %s687_s10, 64  ;;  %p689_p5 = scmp.lt.s32.totalorder %s963_s11, %s687_s10 }
  0x48   : > { %p684_p0 = pnand %p683_p8, %p876_p9  ;;  %p690_p6 = scmp.lt.s32.totalorder %s688_s22, %s682_s6 }
  0x49   : > { %v332_v9 = vld [vmem:[%s271_s5] sm:$0x3]  ;;  %v291_v12 = vsub.f32 %v281_v1, %v290_v11  ;;  %v297_v13 = vsub.f32 %v528_v2, %v290_v11  ;;  %v303_v14 = vsub.f32 %v529_v5, %v290_v11  ;;  %v309_v15 = vsub.f32 %v530_v6, %v290_v11 }
  0x4a   : > { %v335_v10 = vadd.f32 %v531_v8, %v332_v9  ;;  %p685_p2 = pneg %p684_p0  ;;  %p691_p4 = por %p690_p6, %p689_p5 }
  0x4c   : > { %336 = vst [vmem:[%s271_s5] sm:$0x3] %v335_v10  ;;  %p692_p7 = pnand %p691_p4, %p685_p2 }
  0x4e   : > { %695 = shalt.err (!%p692_p7)
}
  0x4f   : > { %s696_s23 = scalar_lea.hbm %s961_s19, 32  ;;  %s700_s9 = scalar_lea.hbm %s1039_s3, 64 }
  0x50   : > { %p697_p1 = scmp.ne.s32.totalorder %s961_s19, %s696_s23  ;;  %p701_p3 = scmp.lt.s32.totalorder %s961_s19, %s1039_s3 }
  0x51   : > { %p702_p8 = scmp.lt.s32.totalorder %s700_s9, %s696_s23 }
  0x52   : > { %p698_p10 = pnand %p697_p1, %p876_p9 }
  0x53   : > { %p703_p0 = por %p702_p8, %p701_p3 }
  0x54   : > { %p699_p13 = pneg %p698_p10 }
  0x56   : > { %p704_p2 = pnand %p703_p0, %p699_p13 }
  0x58   : > { %707 = shalt.err (!%p704_p2)
}
  0x59   : > { %544 = dma.vmem_to_hbm [thread:$0]  (%p876_p9), %s963_s11, 32, %s961_s19, %s343_s21   ;;  %v292_v16 = vmul.f32 1.442695, %v291_v12  ;;  %v298_v17 = vmul.f32 1.442695, %v297_v13  ;;  %vm295_vm1 = vcmp.eq.s32.totalorder %v950_v3, 0 }
  0x5a   : > { %v304_v18 = vmul.f32 1.442695, %v303_v14  ;;  %v310_v19 = vmul.f32 1.442695, %v309_v15  ;;  %vm301_vm2 = vcmp.eq.s32.totalorder %v950_v3, 1  ;;  %vm307_vm3 = vcmp.eq.s32.totalorder %v950_v3, 2  ;;  %s355_s19 = scalar_lea.hbm %s1038_s2, %s534_s7 }
  0x5b   : > { %614 = vpow2.f32 %v292_v16  ;;  %vm313_vm4 = vcmp.eq.s32.totalorder %v950_v3, 3  ;;  %v328_v43 = vld [vmem:[%s947_s4] sm:$0x3]  ;;  %s357_s11 = sshll.u32 %s947_s4, 4  ;;  %s338_s21 = scalar_lea.sflag [#allocation4], %s933_s28  ;;  %s358_s11 = int_to_ptr.vmem [resolvable:$true] %s357_s11 }
  0x5c   : > { %616 = vpow2.f32 %v298_v17  ;;  %s708_s6 = scalar_lea.vmem %s358_s11, 32  ;;  %s804_s8 = smov [#allocation7]  }
  0x5d   : > { %618 = vpow2.f32 %v304_v18  ;;  %p709_p5 = scmp.ne.s32.totalorder %s358_s11, %s708_s6  ;;  %s712_s10 = sshll.u32 %s804_s8, 4  ;;  %s713_s10 = int_to_ptr.vmem [resolvable:$false] %s712_s10 }
  0x5e   : > { %620 = vpow2.f32 %v310_v19  ;;  %s714_s22 = scalar_lea.vmem %s713_s10, 64  ;;  %p715_p7 = scmp.lt.s32.totalorder %s358_s11, %s713_s10 }
  0x5f   : > { %p710_p6 = pnand %p709_p5, %p876_p9  ;;  %p716_p1 = scmp.lt.s32.totalorder %s714_s22, %s708_s6 }
  0x61   : > { %p711_p4 = pneg %p710_p6  ;;  %p717_p10 = por %p716_p1, %p715_p7 }
  0x63   : > { %p718_p13 = pnand %p717_p10, %p711_p4 }
  0x68   : > { %v615_v20 = vpop.eup %614 }
  0x69   : > { %v617_v21 = vpop.eup %616  ;;  %v296_v27 = vsel %vm295_vm1, %v615_v20, 0.0 }
  0x6a   : > { %v619_v22 = vpop.eup %618  ;;  %v300_v23 = vadd.f32 %v617_v21, %v615_v20  ;;  %v302_v28 = vsel %vm301_vm2, %v617_v21, %v296_v27 }
  0x6b   : > { %v621_v24 = vpop.eup %620  ;;  %v308_v30 = vsel %vm307_vm3, %v619_v22, %v302_v28 }
  0x6c   : > { %v306_v25 = vadd.f32 %v619_v22, %v300_v23  ;;  %v314_v33 = vsel %vm313_vm4, %v621_v24, %v308_v30 }
  0x6e   : > { %v312_v26 = vadd.f32 %v621_v24, %v306_v25 }
  0x70   : > { %622 = vrcp.f32 %v312_v26 }
  0x7d   : > { %v623_v29 = vpop.eup %622 }
  0x7e   : > { %v316_v31 = vmul.f32 %v623_v29, %v312_v26 }
  0x80   : > { %v317_v32 = vsub.f32 2.0, %v316_v31 }
  0x82   : > { %v318_v34 = vmul.f32 %v623_v29, %v317_v32 }
  0x84   : > { %v319_v35 = vmul.f32 %v318_v34, %v314_v33 }
  0x86   : > { %v323_v36 = vadd.f32 1e-08, %v319_v35  ;;  %v320_v37 = vsub.f32 1.0, %v319_v35 }
  0x88   : > { %624 = vlog2.f32 %v323_v36  ;;  %v321_v38 = vmul.f32 %v320_v37, %v320_v37 }
  0x8a   : > { %v322_v39 = vmul.f32 -0.25, %v321_v38 }
  0x95   : > { %v625_v40 = vpop.eup %624 }
  0x96   : > { %v325_v41 = vmul.f32 0.6931472, %v625_v40 }
  0x98   : > { %v326_v42 = vmul.f32 %v325_v41, %v322_v39 }
  0x9a   : > { %v329_v44 = vsel %vm327_vm0, %v326_v42, 0.0 }
  0x9b   : > { %v330_v45 = vadd.f32 %v329_v44, %v328_v43 }
  0x9d   : > { %331 = vst [vmem:[%s947_s4] sm:$0x3] %v330_v45 }
  0x9e   : > { %721 = shalt.err (!%p718_p13)
}
  0x9f   : > { %s722_s15 = scalar_lea.hbm %s355_s19, 32  ;;  %s726_s7 = scalar_lea.hbm %s1038_s2, 64 }
  0xa0   : > { %p723_p3 = scmp.ne.s32.totalorder %s355_s19, %s722_s15  ;;  %p727_p2 = scmp.lt.s32.totalorder %s355_s19, %s1038_s2 }
  0xa1   : > { %p728_p5 = scmp.lt.s32.totalorder %s726_s7, %s722_s15 }
  0xa2   : > { %p724_p8 = pnand %p723_p3, %p876_p9 }
  0xa3   : > { %p729_p6 = por %p728_p5, %p727_p2 }
  0xa4   : > { %p725_p0 = pneg %p724_p8 }
  0xa6   : > { %p730_p12 = pnand %p729_p6, %p725_p0 }
  0xa8   : > { %733 = shalt.err (!%p730_p12)
}
  0xa9   : > { %543 = dma.vmem_to_hbm [thread:$0]  (%p876_p9), %s358_s11, 32, %s355_s19, %s338_s21  }
  0xaa PF: > { %s383_s0 = sand.u32 1, %s776_s12   ;;  %p1048_p4 = scmp.ge.s32.totalorder %s796_s17, 2 }
  0xab   : > { %s384_s9 = scalar_lea.sflag [#allocation4], %s383_s0 }
  0xac   : > { %p555_p7 = pnand %p1048_p4, %p883_p11 }
  0xae   : > { %p556_p1 = pneg %p555_p7 }
  0xb0   : > { %767 = dma.done.wait (%p556_p1), %s384_s9, 32  }
  0xb1   : > { %769 = vsyncadd (%p556_p1), %s384_s9, 4294967264  ;;  %s393_s30 = scalar_lea.sflag [#allocation9], %s383_s0 }
  0xb2   : > { %771 = dma.done.wait (%p556_p1), %s393_s30, 32  }
  0xb3   : > { %773 = vsyncadd (%p556_p1), %s393_s30, 4294967264  ;;  %s26_s17 = sadd.s32 1, %s796_s17   ;;  %s1049_s12 = smov %s780_s13 }
  0xb4   : > { %p23_p12 = scmp.ge.s32.totalorder %s26_s17, 4   ;;  %s1050_s13 = smov %s784_s14 }
  0xb5   : > { %s1051_s14 = smov %s881_s26  ;;  %s1052_s15 = smov %s792_s16 }
  0xb6   : > { %s1053_s16 = smov %s1055_s20  ;;  %25 = sbr.rel (!%p23_p12) target bundleno = 12 (0xc), region = 110 }
  0xbb   :  { %398 = vsyncpa [#allocation3], 1 }
  0xbc   :  { %400 = vsyncpa [#allocation3 + $0x1], 1 }
  0xbd   :  { %401 = vsyncpa [#allocation6], 1 }
  0xbe   :  { %403 = vsyncpa [#allocation6 + $0x1], 1 }
  0xbf   :  { %404 = vsyncpa [#allocation4], 1 }
  0xc0   :  { %406 = vsyncpa [#allocation4 + $0x1], 1 }
  0xc1   :  { %407 = vsyncpa [#allocation9], 1 }
  0xc2   :  { %409 = vsyncpa [#allocation9 + $0x1], 1 }

</bundles_post_ra>
